<compile_context>
chip_gen: v6e
topology: v6e:2x2x1
jax: 0.10.0
libtpu: 0.0.40
codegen_flags: <defaults>
</compile_context>

<pallas_src>
import jax
import jax.numpy as jnp
from jax.experimental import pallas as pl
from jax.experimental.pallas import tpu as pltpu

BN_EPS = 1e-5


def _linear_block_kernel(x_ref, w_ref, p_ref, o_ref):
    # x_ref: (N, in_dim)
    # w_ref: (tile_f, in_dim)   -- torch layout (out_dim, in_dim), feature-tiled
    # p_ref: (2, tile_f)        -- row 0 = gamma, row 1 = beta
    # o_ref: (N, tile_f)

    # ---- Linear (no bias: it cancels under batch-stat BN): z = x @ W^T  (MXU)
    z = jax.lax.dot_general(
        x_ref[...], w_ref[...],
        dimension_numbers=(((1,), (1,)), ((), ())),
        preferred_element_type=jnp.float32,
    )                                                    # (N, tile_f) f32

    # ---- BatchNorm1d training-mode stats, single pass over the batch axis ----
    n = z.shape[0]
    inv_n = jnp.float32(1.0 / n)
    s1 = jnp.sum(z, axis=0, keepdims=True)               # (1, tile_f)
    s2 = jnp.sum(z * z, axis=0, keepdims=True)           # (1, tile_f)
    mean = s1 * inv_n
    var = jnp.maximum(s2 * inv_n - mean * mean, 0.0)     # biased variance
    inv_std = jax.lax.rsqrt(var + BN_EPS)

    params = p_ref[...]                                  # (2, tile_f)
    gamma = params[0:1, :]
    beta = params[1:2, :]

    # ---- Folded affine + ReLU: out = max(z*scale + shift, 0) ----
    scale = gamma * inv_std                              # (1, tile_f)
    shift = beta - mean * scale                          # (1, tile_f)
    o_ref[...] = jnp.maximum(z * scale + shift, 0.0).astype(o_ref.dtype)


def _pick_feature_tile(out_dim):
    # Lane-dense, MXU-friendly feature tiles when out_dim is large; otherwise
    # keep the whole feature axis in one block.  Batch axis is never tiled.
    if out_dim % 256 == 0:
        return 256
    if out_dim % 128 == 0:
        return 128
    return out_dim


@jax.jit
def linear_block_forward(x, weight, bias, gamma, beta):
    """x: (N, in_dim); weight: (out_dim, in_dim) torch layout; bias/gamma/beta: (out_dim,).

    `bias` is accepted for API parity with nn.Linear but is not used: with
    BatchNorm1d in training mode (batch statistics) it cancels exactly.
    """
    del bias  # cancels under batch-statistic BatchNorm
    n, in_dim = x.shape
    out_dim = weight.shape[0]

    params = jnp.stack([gamma, beta], axis=0)            # (2, out_dim), one DMA

    tf = _pick_feature_tile(out_dim)
    grid = (out_dim // tf,)

    return pl.pallas_call(
        _linear_block_kernel,
        out_shape=jax.ShapeDtypeStruct((n, out_dim), jnp.float32),
        grid=grid,
        in_specs=[
            pl.BlockSpec((n, in_dim), lambda j: (0, 0)),   # full x every tile
            pl.BlockSpec((tf, in_dim), lambda j: (j, 0)),  # feature slice of W
            pl.BlockSpec((2, tf), lambda j: (0, j)),       # packed gamma/beta
        ],
        out_specs=pl.BlockSpec((n, tf), lambda j: (0, j)),
        compiler_params=pltpu.CompilerParams(
            dimension_semantics=("parallel",),             # v7x: 2nd TC usable
        ),
    )(x, weight, params)


def _reference_forward(x, weight, bias, gamma, beta):
    z = x @ weight.T + bias
    mean = jnp.mean(z, axis=0, keepdims=True)
    var = jnp.mean((z - mean) ** 2, axis=0, keepdims=True)
    y = (z - mean) / jnp.sqrt(var + BN_EPS) * gamma + beta
    return jnp.maximum(y, 0.0)


if __name__ == "__main__":
    # Small shapes consistent with the module: batch=8, in_dim=32, out_dim=16.
    N, IN_DIM, OUT_DIM = 8, 32, 16

    key = jax.random.PRNGKey(0)
    kx, kw, kb, kg, kbeta = jax.random.split(key, 5)

    x = jax.random.normal(kx, (N, IN_DIM), dtype=jnp.float32)

    # Deterministic parameter init (mimicking nn.Linear uniform bound; BN gamma
    # near 1, beta near 0).
    bound = 1.0 / (IN_DIM ** 0.5)
    weight = jax.random.uniform(kw, (OUT_DIM, IN_DIM), minval=-bound, maxval=bound,
                                dtype=jnp.float32)
    bias = jax.random.uniform(kb, (OUT_DIM,), minval=-bound, maxval=bound,
                              dtype=jnp.float32)
    gamma = jnp.ones((OUT_DIM,), dtype=jnp.float32) + 0.1 * jax.random.normal(
        kg, (OUT_DIM,), dtype=jnp.float32)
    beta = 0.1 * jax.random.normal(kbeta, (OUT_DIM,), dtype=jnp.float32)

    out = linear_block_forward(x, weight, bias, gamma, beta)
    out = jax.block_until_ready(out)

    ref = _reference_forward(x, weight, bias, gamma, beta)
    assert out.shape == (N, OUT_DIM)
    assert jnp.allclose(out, ref, atol=1e-4, rtol=1e-4), "mismatch vs reference"

    print("KERNEL_OK")
</pallas_src>

<mosaic_0001>
module attributes {stable_mosaic.version = 11 : i64} {
  func.func @_linear_block_kernel(%arg0: i32, %arg1: memref<8x32xf32, #tpu.memory_space<vmem>>, %arg2: memref<16x32xf32, #tpu.memory_space<vmem>>, %arg3: memref<2x16xf32, #tpu.memory_space<vmem>>, %arg4: memref<8x16xf32, #tpu.memory_space<vmem>>) attributes {dimension_semantics = [#tpu.dimension_semantics<parallel>], iteration_bounds = array<i64: 1>, scalar_prefetch = 0 : i64, scratch_operands = 0 : i64, tpu.core_type = #tpu.core_type<tc>, window_params = [{pipeline_mode = #tpu.pipeline_mode<synchronous>, transform_indices = @transform_0, window_bounds = array<i64: 8, 32>}, {transform_indices = @transform_1, window_bounds = array<i64: 16, 32>}, {transform_indices = @transform_2, window_bounds = array<i64: 2, 16>}, {transform_indices = @transform_3, window_bounds = array<i64: 8, 16>}]} {
    %c0 = arith.constant 0 : index
    %c0_0 = arith.constant 0 : index
    %0 = vector.load %arg1[%c0, %c0_0] : memref<8x32xf32, #tpu.memory_space<vmem>>, vector<8x32xf32>
    %c0_1 = arith.constant 0 : index
    %c0_2 = arith.constant 0 : index
    %1 = vector.load %arg2[%c0_1, %c0_2] : memref<16x32xf32, #tpu.memory_space<vmem>>, vector<16x32xf32>
    %cst = arith.constant dense<0.000000e+00> : vector<8x16xf32>
    %2 = tpu.matmul %0, %1, %cst {dimension_numbers = #tpu.dot_dimension_numbers<[1], [1], [0], [0], [0, 0, 1, 0], [], []>} : vector<8x32xf32>, vector<16x32xf32>, vector<8x16xf32> -> vector<8x16xf32>
    %cst_3 = arith.constant dense<0.000000e+00> : vector<16xf32>
    %3 = vector.multi_reduction <add>, %2, %cst_3 [0] : vector<8x16xf32> to vector<16xf32>
    %4 = vector.shape_cast %3 : vector<16xf32> to vector<1x16xf32>
    %5 = arith.mulf %2, %2 : vector<8x16xf32>
    %cst_4 = arith.constant dense<0.000000e+00> : vector<16xf32>
    %6 = vector.multi_reduction <add>, %5, %cst_4 [0] : vector<8x16xf32> to vector<16xf32>
    %7 = vector.shape_cast %6 : vector<16xf32> to vector<1x16xf32>
    %cst_5 = arith.constant 1.250000e-01 : f32
    %8 = vector.broadcast %cst_5 : f32 to vector<1x16xf32>
    %9 = arith.mulf %4, %8 : vector<1x16xf32>
    %cst_6 = arith.constant 1.250000e-01 : f32
    %10 = vector.broadcast %cst_6 : f32 to vector<1x16xf32>
    %11 = arith.mulf %7, %10 : vector<1x16xf32>
    %12 = arith.mulf %9, %9 : vector<1x16xf32>
    %13 = arith.subf %11, %12 : vector<1x16xf32>
    %cst_7 = arith.constant 0.000000e+00 : f32
    %14 = vector.broadcast %cst_7 : f32 to vector<1x16xf32>
    %15 = arith.maximumf %13, %14 : vector<1x16xf32>
    %cst_8 = arith.constant 9.99999974E-6 : f32
    %16 = vector.broadcast %cst_8 : f32 to vector<1x16xf32>
    %17 = arith.addf %15, %16 : vector<1x16xf32>
    %18 = math.rsqrt %17 : vector<1x16xf32>
    %c0_9 = arith.constant 0 : index
    %c0_10 = arith.constant 0 : index
    %19 = vector.load %arg3[%c0_9, %c0_10] : memref<2x16xf32, #tpu.memory_space<vmem>>, vector<2x16xf32>
    %20 = vector.extract_strided_slice %19 {offsets = [0, 0], sizes = [1, 16], strides = [1, 1]} : vector<2x16xf32> to vector<1x16xf32>
    %21 = vector.extract_strided_slice %19 {offsets = [1, 0], sizes = [1, 16], strides = [1, 1]} : vector<2x16xf32> to vector<1x16xf32>
    %22 = arith.mulf %20, %18 : vector<1x16xf32>
    %23 = arith.mulf %9, %22 : vector<1x16xf32>
    %24 = arith.subf %21, %23 : vector<1x16xf32>
    %25 = vector.broadcast %22 : vector<1x16xf32> to vector<8x16xf32>
    %26 = arith.mulf %2, %25 : vector<8x16xf32>
    %27 = vector.broadcast %24 : vector<1x16xf32> to vector<8x16xf32>
    %28 = arith.addf %26, %27 : vector<8x16xf32>
    %cst_11 = arith.constant 0.000000e+00 : f32
    %29 = vector.broadcast %cst_11 : f32 to vector<8x16xf32>
    %30 = arith.maximumf %28, %29 : vector<8x16xf32>
    %c0_12 = arith.constant 0 : index
    %c0_13 = arith.constant 0 : index
    %31 = vector.load %arg4[%c0_12, %c0_13] : memref<8x16xf32, #tpu.memory_space<vmem>>, vector<8x16xf32>
    tpu.vector_store %arg4[%c0_12, %c0_13], %30 {strides = array<i32>} : memref<8x16xf32, #tpu.memory_space<vmem>>, vector<8x16xf32>,
    return
  }
  func.func @transform_0(%arg0: i32) -> (i32, i32) {
    %c0_i32 = arith.constant 0 : i32
    %c0_i32_0 = arith.constant 0 : i32
    %c0_i32_1 = arith.constant 0 : i32
    return %c0_i32, %c0_i32_0 : i32, i32
  }
  func.func @transform_1(%arg0: i32) -> (i32, i32) {
    %c0_i32 = arith.constant 0 : i32
    %c0_i32_0 = arith.constant 0 : i32
    return %arg0, %c0_i32 : i32, i32
  }
  func.func @transform_2(%arg0: i32) -> (i32, i32) {
    %c0_i32 = arith.constant 0 : i32
    %c0_i32_0 = arith.constant 0 : i32
    return %c0_i32, %arg0 : i32, i32
  }
  func.func @transform_3(%arg0: i32) -> (i32, i32) {
    %c0_i32 = arith.constant 0 : i32
    %c0_i32_0 = arith.constant 0 : i32
    return %c0_i32, %arg0 : i32, i32
  }
}

</mosaic_0001>

<bundles_post_ra>
// kernel: linear_block_forward.1
= control target key start
LH: loop header
LB: loop body
LE: loop exit
PB: predicated region body
PF: predicated region fallthrough
CT: control target
= control target key end

     0   :  { %8 = vsyncpa [#allocation3], 0  ;;  %s312_s0 = inlined_call_operand.hbm [shape: f32[8,32], index: 0, kind: input, shape index: {}]   ;;  %s313_s1 = inlined_call_operand.hbm [shape: f32[16,32], index: 1, kind: input, shape index: {}]   ;;  %s314_s2 = inlined_call_operand.vmem [shape: f32[2,16], index: 2, kind: input, shape index: {}]   ;;  %s315_s3 = inlined_call_operand.hbm [shape: f32[8,16], index: 3, kind: output, shape index: {}]  }
   0x1   :  { %9 = vsyncpa [#allocation6], 0 }
   0x2   :  { %10 = vsyncpa [#allocation4], 0  ;;  %s270_s12 = smov [#allocation2]   ;;  %s271_s14 = smov [#allocation5]  }
   0x3   :  { %s17_s13 = sshll.u32 %s270_s12, 4  ;;  %s26_s15 = sshll.u32 %s271_s14, 4  ;;  %s18_s13 = int_to_ptr.vmem [resolvable:$true] %s17_s13  ;;  %s27_s15 = int_to_ptr.vmem [resolvable:$true] %s26_s15 }
   0x4   :  { %s212_s16 = scalar_lea.vmem %s18_s13, 128  ;;  %p217_p1 = scmp.lt.s32.totalorder %s18_s13, %s18_s13 }
   0x5   :  { %p213_p0 = scmp.ne.s32.totalorder %s18_s13, %s212_s16  ;;  %p218_p2 = scmp.lt.s32.totalorder %s212_s16, %s212_s16 }
   0x7   :  { %p219_p3 = por %p218_p2, %p217_p1 }
   0x9   :  { %p220_p4 = pnand %p219_p3, %p213_p0 }
   0xb   :  { %223 = shalt.err (!%p220_p4)
}
   0xc   :  { %20 = dma.hbm_to_vmem [thread:$0]  %s312_s0, 128, %s18_s13, [#allocation3]  }
   0xd   :  { %s232_s19 = scalar_lea.vmem %s27_s15, 256  ;;  %p237_p6 = scmp.lt.s32.totalorder %s27_s15, %s27_s15 }
   0xe   :  { %p233_p5 = scmp.ne.s32.totalorder %s27_s15, %s232_s19  ;;  %p238_p7 = scmp.lt.s32.totalorder %s232_s19, %s232_s19 }
  0x10   :  { %p239_p8 = por %p238_p7, %p237_p6 }
  0x12   :  { %p240_p9 = pnand %p239_p8, %p233_p5 }
  0x14   :  { %243 = shalt.err (!%p240_p9)
}
  0x15   :  { %s272_s20 = smov 128   ;;  %s273_s21 = smov 8  }
  0x16   :  { %32 = dma.hbm_to_vmem [thread:$0]  %s313_s1, 256, %s27_s15, [#allocation6], %s272_s20, %s272_s20, %s273_s21  }
  0x17   :  { %264 = dma.done.wait [#allocation3], 128  }
  0x18   :  { %265 = vsyncadd [#allocation3], 4294967168 }
  0x19   :  { %266 = dma.done.wait [#allocation6], 256  }
  0x1a   :  { %267 = vsyncadd [#allocation6], 4294967040  ;;  %v274_v0 = vmov 0.0   ;;  %vm275_vm0 = vmmov 0   ;;  %vm44_vm1 = vcmask 261120   ;;  %v43_v1 = vld [vmem:[#allocation5 + $0x8] sm:$0xff]  ;;  %v154_v27 = vlaneseq }
  0x1b   :  { %188 = vmatprep.subr.mxu0 %v274_v0  ;;  %192 = vmatprep.mubr.msk.f32.mxu0 %vm275_vm0, %v274_v0  ;;  %v42_v2 = vld [vmem:[#allocation5] sm:$0xff]  ;;  %v41_v3 = vld [vmem:[#allocation2] sm:$0xff]  ;;  %vm124_vm2 = vcmask 130048   ;;  %s276_s24 = smov [#allocation7]  }
  0x1c   :  { %189 = vmatpush3.xpose.msk.msra.mxu0 %vm44_vm1, %v43_v1  ;;  %v155_v28 = vshrl.u32 %v154_v27, 7  ;;  %v147_v29 = vld [vmem:[%s314_s2] sm:$0x3]  ;;  %s172_s25 = sshll.u32 %s276_s24, 4  ;;  %s173_s25 = int_to_ptr.vmem [resolvable:$true] %s172_s25 }
  0x1d   :  { %190 = vmatprep.subr.mxu0 %v274_v0  ;;  %s244_s26 = scalar_lea.vmem %s173_s25, 128  ;;  %p249_p11 = scmp.lt.s32.totalorder %s173_s25, %s173_s25 }
  0x1e   :  { %v156_v32 = vsub.s32 0, %v155_v28  ;;  %v161_v36 = vsub.s32 1, %v155_v28  ;;  %p245_p10 = scmp.ne.s32.totalorder %s173_s25, %s244_s26  ;;  %p250_p12 = scmp.lt.s32.totalorder %s244_s26, %s244_s26 }
  0x20   :  { %191 = vmatpush3.xpose.msk.msra.mxu0 %vm44_vm1, %v42_v2  ;;  %p251_p13 = por %p250_p12, %p249_p11 }
  0x22   :  { %p252_p0 = pnand %p251_p13, %p245_p10 }
  0x23   :  { %193 = vmatmul.mubr.msk.f32.vlgmr.msra.gmra.mxu0 %vm44_vm1, %v41_v3 }
  0xe3   :  { %v120_v4 = vpop.f32.mrf.mxu0 }
  0xe4   :  { %v125_v5 = vsel %vm124_vm2, %v120_v4, 0.0  ;;  %v132_v6 = vmul.f32 %v120_v4, %v120_v4 }
  0xe5   :  { %v126_v7 = vrot.slane %v125_v5, 4  ;;  %v194_v8 = vpop.f32.mrf.mxu0 }
  0xe6   :  { %v133_v9 = vsel %vm124_vm2, %v132_v6, 0.0 }
  0xe7   :  { %v127_v10 = vadd.f32 %v126_v7, %v125_v5  ;;  %v134_v11 = vrot.slane %v133_v9, 4 }
  0xe9   :  { %v128_v12 = vrot.slane %v127_v10, 2  ;;  %v135_v13 = vadd.f32 %v134_v11, %v133_v9 }
  0xeb   :  { %v129_v14 = vadd.f32 %v128_v12, %v127_v10  ;;  %v136_v15 = vrot.slane %v135_v13, 2 }
  0xed   :  { %v130_v16 = vrot.slane %v129_v14, 1  ;;  %v137_v17 = vadd.f32 %v136_v15, %v135_v13 }
  0xef   :  { %v131_v18 = vadd.f32 %v130_v16, %v129_v14  ;;  %v138_v19 = vrot.slane %v137_v17, 1 }
  0xf1   :  { %v139_v20 = vadd.f32 %v138_v19, %v137_v17  ;;  %v140_v21 = vmul.f32 0.125, %v131_v18 }
  0xf3   :  { %v141_v22 = vmul.f32 0.125, %v139_v20  ;;  %v142_v23 = vmul.f32 %v140_v21, %v140_v21 }
  0xf5   :  { %v143_v24 = vsub.f32 %v141_v22, %v142_v23 }
  0xf7   :  { %v144_v25 = vmax.f32 %v143_v24, 0.0 }
  0xf9   :  { %v145_v26 = vadd.f32 1e-05, %v144_v25 }
  0xfb   :  { %202 = vrsqrt.f32 %v145_v26 }
 0x108   :  { %v203_v30 = vpop.eup %202 }
 0x109   :  { %v148_v31 = vmul.f32 %v203_v30, %v147_v29 }
 0x10b   :  { %v149_v33 = vmul.f32 %v148_v31, %v140_v21  ;;  %v157_v35 = vrot.slane %v148_v31, %v156_v32 }
 0x10d   :  { %v151_v34 = vrot.slane %v149_v33, 7  ;;  %v158_v38 = vmul.f32 %v157_v35, %v120_v4 }
 0x10f   :  { %v153_v37 = vsub.f32 %v147_v29, %v151_v34 }
 0x111   :  { %v162_v39 = vrot.slane %v153_v37, %v161_v36 }
 0x113   :  { %v163_v40 = vadd.f32 %v162_v39, %v158_v38 }
 0x115   :  { %v164_v41 = vmax.f32 %v163_v40, 0.0 }
 0x117   :  { %165 = vst.msk [vmem:[#allocation7] sm:$0xff] %vm124_vm2, %v164_v41 }
 0x118   :  { %255 = shalt.err (!%p252_p0)
}
 0x119   :  { %175 = dma.vmem_to_hbm [thread:$0]  %s173_s25, 128, %s315_s3, [#allocation4]  }
 0x11a   :  { %268 = dma.done.wait [#allocation4], 128  }
 0x11b   :  { %269 = vsyncadd [#allocation4], 4294967168 }
 0x11c   :  { %179 = vsyncpa [#allocation3], 1 }
 0x11d   :  { %180 = vsyncpa [#allocation6], 1 }
 0x11e   :  { %181 = vsyncpa [#allocation4], 1 }

</bundles_post_ra>
